<compile_context>
chip_gen: v6e
topology: v6e:2x2x1
jax: 0.10.0
libtpu: 0.0.40
codegen_flags: <defaults>
</compile_context>

<pallas_src>
import functools

import jax
import jax.numpy as jnp
from jax.experimental import pallas as pl
from jax.experimental.pallas import tpu as pltpu


def _masked_readout_kernel(scale_ref, seq_ref, msk_ref, out_ref, acc_ref,
                           *, n_valid, tn, ragged):
    # scale_ref: SMEM (1,) f32   -- 1 / sum(msk), precomputed outside
    # seq_ref  : VMEM (1, tn, D) -- native dtype (no f32 up-cast of the tile)
    # msk_ref  : VMEM (1, 1, tn)
    # out_ref  : VMEM (1, 1, D)
    # acc_ref  : VMEM (1, D) f32 scratch, resident across the N grid axis
    n = pl.program_id(1)
    n_last = pl.num_programs(1) - 1

    @pl.when(n == 0)
    def _init():
        acc_ref[...] = jnp.zeros_like(acc_ref)

    def accumulate(tail):
        seq = seq_ref[0]                                # (tn, D)
        msk = msk_ref[0]                                # (1, tn)
        if tail:
            # Zero out-of-bounds rows/lanes of the ragged last block.  Pallas
            # does not guarantee the padded region is zero, and 0 * garbage
            # could be NaN, so both operands are cleaned.
            start = n * tn
            rows = jax.lax.broadcasted_iota(jnp.int32, (tn, 1), 0) + start
            lanes = jax.lax.broadcasted_iota(jnp.int32, (1, tn), 1) + start
            seq = jnp.where(rows < n_valid, seq, 0)
            msk = jnp.where(lanes < n_valid, msk, 0)
        # NOTE: casting msk to seq.dtype is exact for 0/1 masks (the DGI case);
        # accumulation is in float32 regardless.
        acc_ref[...] += jnp.dot(msk.astype(seq.dtype), seq,
                                preferred_element_type=jnp.float32)

    if ragged:
        @pl.when(n != n_last)
        def _body():
            accumulate(False)

        @pl.when(n == n_last)
        def _tail():
            accumulate(True)
    else:
        accumulate(False)

    @pl.when(n == n_last)
    def _finalize():
        out_ref[0] = (acc_ref[...] * scale_ref[0]).astype(out_ref.dtype)


def _mean_readout_kernel(seq_ref, out_ref, acc_ref, *, n_valid, tn, ragged, inv_n):
    # Same structure; an implicit all-ones mask is folded into the matmul and
    # the static scale 1/N is closed over (no SMEM operand needed).
    n = pl.program_id(1)
    n_last = pl.num_programs(1) - 1

    @pl.when(n == 0)
    def _init():
        acc_ref[...] = jnp.zeros_like(acc_ref)

    def accumulate(tail):
        seq = seq_ref[0]                                # (tn, D)
        if tail:
            start = n * tn
            rows = jax.lax.broadcasted_iota(jnp.int32, (tn, 1), 0) + start
            seq = jnp.where(rows < n_valid, seq, 0)     # zero padded rows
        ones = jnp.ones((1, tn), dtype=seq.dtype)
        acc_ref[...] += jnp.dot(ones, seq, preferred_element_type=jnp.float32)

    if ragged:
        @pl.when(n != n_last)
        def _body():
            accumulate(False)

        @pl.when(n == n_last)
        def _tail():
            accumulate(True)
    else:
        accumulate(False)

    @pl.when(n == n_last)
    def _finalize():
        out_ref[0] = (acc_ref[...] * inv_n).astype(out_ref.dtype)


def avg_readout(seq, msk=None, *, block_bytes=8 << 20, n_tile=None):
    """Pallas TPU implementation of AvgReadout.forward(seq, msk).

    block_bytes: target VMEM bytes of one (lane-padded) seq block per grid step.
    n_tile:      optional explicit N-tile override (rounded to a multiple of 128
                 when it actually tiles N); mainly for testing.
    """
    B, N, D = seq.shape
    out_dtype = seq.dtype
    itemsize = jnp.dtype(seq.dtype).itemsize

    # ---- choose the N tile by BYTES (lane-padded footprint), no row cap -----
    d_pad = -(-D // 128) * 128                 # last dim pads to 128 lanes in VMEM
    row_bytes = d_pad * itemsize
    if n_tile is None:
        max_rows = max(128, (block_bytes // row_bytes) // 128 * 128)
    else:
        max_rows = max(128, (int(n_tile) // 128) * 128)
    tn = N if N <= max_rows else max_rows      # tn == N (full extent) or mult. of 128
    n_tiles = -(-N // tn)
    ragged = (N % tn) != 0                     # ragged last tile handled in-kernel

    grid = (B, n_tiles)                        # B parallel (megacore), N reduction last
    seq_spec = pl.BlockSpec((1, tn, D), lambda b, n: (b, n, 0))
    out_spec = pl.BlockSpec((1, 1, D), lambda b, n: (b, 0, 0))      # resident acc
    out_shape = jax.ShapeDtypeStruct((B, 1, D), out_dtype)
    scratch = [pltpu.VMEM((1, D), jnp.float32)]

    # Explicit scoped-VMEM limit: covers double-buffered seq blocks on v5e's
    # 16 MiB default while staying well under v7x's 64 MiB physical VMEM.
    seq_block_bytes = tn * row_bytes
    vmem_limit = int(min(48 << 20, max(32 << 20, 2 * seq_block_bytes + (8 << 20))))
    compiler_params = pltpu.CompilerParams(
        dimension_semantics=("parallel", "arbitrary"),
        vmem_limit_bytes=vmem_limit)

    if msk is None:
        kernel = functools.partial(_mean_readout_kernel,
                                   n_valid=N, tn=tn, ragged=ragged, inv_n=1.0 / N)
        out = pl.pallas_call(
            kernel,
            out_shape=out_shape,
            grid=grid,
            in_specs=[seq_spec],
            out_specs=out_spec,
            scratch_shapes=scratch,
            compiler_params=compiler_params,
        )(seq)
    else:
        assert msk.shape == (B, N), f"expected msk shape {(B, N)}, got {msk.shape}"
        # Global scale (tiny vs. seq traffic); sum(msk)==0 -> inf/nan, as in torch.
        denom = jnp.sum(msk.astype(jnp.float32))
        scale = (1.0 / denom).reshape(1)
        msk3 = msk.reshape(B, 1, N)            # mask rows along lanes (no copy)
        msk_spec = pl.BlockSpec((1, 1, tn), lambda b, n: (b, 0, n))
        smem_spec = pl.BlockSpec(memory_space=pltpu.MemorySpace.SMEM)
        kernel = functools.partial(_masked_readout_kernel,
                                   n_valid=N, tn=tn, ragged=ragged)
        out = pl.pallas_call(
            kernel,
            out_shape=out_shape,
            grid=grid,
            in_specs=[smem_spec, seq_spec, msk_spec],
            out_specs=out_spec,
            scratch_shapes=scratch,
            compiler_params=compiler_params,
        )(scale, seq, msk3)

    return out.reshape(B, D)


def _reference(seq, msk=None):
    # Pure-JAX reference mirroring the PyTorch module exactly.
    if msk is None:
        return jnp.mean(seq, axis=1)
    m = msk[:, :, None]
    return jnp.sum(seq * m, axis=1) / jnp.sum(m)


if __name__ == "__main__":
    # Tolerance note: the f32 contraction runs on the MXU at default matmul
    # precision (bf16 passes), so allow a few-1e-3 deviation vs the f32 ref.
    ATOL = RTOL = 5e-3

    key = jax.random.PRNGKey(0)
    k1, k2, k3, k4 = jax.random.split(key, 4)

    # --- small shape straight from the module (single full-N tile) ----------
    B, N, D = 2, 8, 32
    seq = jax.random.normal(k1, (B, N, D), dtype=jnp.float32)
    msk = (jax.random.uniform(k2, (B, N)) > 0.3).astype(jnp.float32)
    msk = msk.at[0, 0].set(1.0)          # ensure sum(msk) > 0

    out_masked = avg_readout(seq, msk)
    out_mean = avg_readout(seq, None)
    jax.block_until_ready((out_masked, out_mean))
    assert out_masked.shape == (B, D) and out_mean.shape == (B, D)
    assert jnp.allclose(out_masked, _reference(seq, msk), atol=ATOL, rtol=RTOL), \
        "masked path mismatch"
    assert jnp.allclose(out_mean, _reference(seq, None), atol=ATOL, rtol=RTOL), \
        "mean path mismatch"

    # --- larger N: multi-tile accumulator with in-kernel ragged tail --------
    B2, N2, D2 = 2, 1100, 128            # 1100 % 256 != 0 -> ragged last tile
    seq2 = jax.random.normal(k3, (B2, N2, D2), dtype=jnp.float32)
    msk2 = (jax.random.uniform(k4, (B2, N2)) > 0.5).astype(jnp.float32)
    msk2 = msk2.at[0, 0].set(1.0)

    out2_masked = avg_readout(seq2, msk2, n_tile=256)   # 5 N-tiles, no wrapper pad
    out2_mean = avg_readout(seq2, None, n_tile=256)
    out3_masked = avg_readout(seq2, msk2)               # byte heuristic: single N tile
    jax.block_until_ready((out2_masked, out2_mean, out3_masked))
    assert jnp.allclose(out2_masked, _reference(seq2, msk2), atol=ATOL, rtol=RTOL), \
        "tiled masked path mismatch"
    assert jnp.allclose(out2_mean, _reference(seq2, None), atol=ATOL, rtol=RTOL), \
        "tiled mean path mismatch"
    assert jnp.allclose(out3_masked, _reference(seq2, msk2), atol=ATOL, rtol=RTOL), \
        "single-tile masked path mismatch"

    print("KERNEL_OK")
</pallas_src>

<mosaic_0001>
module attributes {stable_mosaic.version = 11 : i64} {
  func.func @_masked_readout_kernel(%arg0: i32, %arg1: i32, %arg2: memref<1xf32, #tpu.memory_space<smem>>, %arg3: memref<1x8x32xf32, #tpu.memory_space<vmem>>, %arg4: memref<1x1x8xf32, #tpu.memory_space<vmem>>, %arg5: memref<1x1x32xf32, #tpu.memory_space<vmem>>, %arg6: memref<1x32xf32, #tpu.memory_space<vmem>>) attributes {dimension_semantics = [#tpu.dimension_semantics<parallel>, #tpu.dimension_semantics<arbitrary>], iteration_bounds = array<i64: 2, 1>, scalar_prefetch = 0 : i64, scratch_operands = 1 : i64, tpu.core_type = #tpu.core_type<tc>, window_params = [{transform_indices = @transform_0, window_bounds = array<i64: 1>}, {transform_indices = @transform_1, window_bounds = array<i64: 1, 8, 32>}, {transform_indices = @transform_2, window_bounds = array<i64: 1, 1, 8>}, {transform_indices = @transform_3, window_bounds = array<i64: 1, 1, 32>}]} {
    %c0_i32 = arith.constant 0 : i32
    %0 = arith.cmpi eq, %arg1, %c0_i32 : i32
    %1 = arith.extui %0 : i1 to i32
    %c0_i32_0 = arith.constant 0 : i32
    %2 = arith.cmpi ne, %1, %c0_i32_0 : i32
    scf.if %2 {
      %cst_12 = arith.constant 0.000000e+00 : f32
      %14 = vector.broadcast %cst_12 : f32 to vector<1x32xf32>
      %c0_13 = arith.constant 0 : index
      %c0_14 = arith.constant 0 : index
      %15 = vector.load %arg6[%c0_13, %c0_14] : memref<1x32xf32, #tpu.memory_space<vmem>>, vector<1x32xf32>
      tpu.vector_store %arg6[%c0_13, %c0_14], %14 {strides = array<i32>} : memref<1x32xf32, #tpu.memory_space<vmem>>, vector<1x32xf32>,
    } else {
    }
    %c0 = arith.constant 0 : index
    %c0_1 = arith.constant 0 : index
    %c0_2 = arith.constant 0 : index
    %3 = vector.load %arg3[%c0, %c0_1, %c0_2] : memref<1x8x32xf32, #tpu.memory_space<vmem>>, vector<1x8x32xf32>
    %4 = vector.shape_cast %3 : vector<1x8x32xf32> to vector<8x32xf32>
    %c0_3 = arith.constant 0 : index
    %c0_4 = arith.constant 0 : index
    %c0_5 = arith.constant 0 : index
    %5 = vector.load %arg4[%c0_3, %c0_4, %c0_5] : memref<1x1x8xf32, #tpu.memory_space<vmem>>, vector<1x1x8xf32>
    %6 = vector.shape_cast %5 : vector<1x1x8xf32> to vector<1x8xf32>
    %c0_6 = arith.constant 0 : index
    %c0_7 = arith.constant 0 : index
    %7 = vector.load %arg6[%c0_6, %c0_7] : memref<1x32xf32, #tpu.memory_space<vmem>>, vector<1x32xf32>
    %cst = arith.constant dense<0.000000e+00> : vector<1x32xf32>
    %8 = tpu.matmul %6, %4, %cst {dimension_numbers = #tpu.dot_dimension_numbers<[1], [0], [0], [1], [0, 0, 1, 1], [], []>} : vector<1x8xf32>, vector<8x32xf32>, vector<1x32xf32> -> vector<1x32xf32>
    %9 = arith.addf %7, %8 : vector<1x32xf32>
    %c0_8 = arith.constant 0 : index
    %c0_9 = arith.constant 0 : index
    %10 = vector.load %arg6[%c0_8, %c0_9] : memref<1x32xf32, #tpu.memory_space<vmem>>, vector<1x32xf32>
    tpu.vector_store %arg6[%c0_8, %c0_9], %9 {strides = array<i32>} : memref<1x32xf32, #tpu.memory_space<vmem>>, vector<1x32xf32>,
    %c0_i32_10 = arith.constant 0 : i32
    %11 = arith.cmpi eq, %arg1, %c0_i32_10 : i32
    %12 = arith.extui %11 : i1 to i32
    %c0_i32_11 = arith.constant 0 : i32
    %13 = arith.cmpi ne, %12, %c0_i32_11 : i32
    scf.if %13 {
      %c0_12 = arith.constant 0 : index
      %c0_13 = arith.constant 0 : index
      %14 = vector.load %arg6[%c0_12, %c0_13] : memref<1x32xf32, #tpu.memory_space<vmem>>, vector<1x32xf32>
      %c0_14 = arith.constant 0 : index
      %15 = memref.load %arg2[%c0_14] : memref<1xf32, #tpu.memory_space<smem>>
      %16 = vector.broadcast %15 : f32 to vector<1x32xf32>
      %17 = arith.mulf %14, %16 : vector<1x32xf32>
      %c0_15 = arith.constant 0 : index
      %c0_16 = arith.constant 0 : index
      %c0_17 = arith.constant 0 : index
      %18 = vector.load %arg5[%c0_15, %c0_16, %c0_17] : memref<1x1x32xf32, #tpu.memory_space<vmem>>, vector<1x1x32xf32>
      %19 = vector.shape_cast %18 : vector<1x1x32xf32> to vector<1x32xf32>
      %20 = vector.shape_cast %17 : vector<1x32xf32> to vector<1x1x32xf32>
      tpu.vector_store %arg5[%c0_15, %c0_16, %c0_17], %20 {strides = array<i32>} : memref<1x1x32xf32, #tpu.memory_space<vmem>>, vector<1x1x32xf32>,
    } else {
    }
    return
  }
  func.func @transform_0(%arg0: i32, %arg1: i32) -> i32 {
    %c0_i32 = arith.constant 0 : i32
    %c0_i32_0 = arith.constant 0 : i32
    return %c0_i32 : i32
  }
  func.func @transform_1(%arg0: i32, %arg1: i32) -> (i32, i32, i32) {
    %c0_i32 = arith.constant 0 : i32
    %c0_i32_0 = arith.constant 0 : i32
    return %arg0, %arg1, %c0_i32 : i32, i32, i32
  }
  func.func @transform_2(%arg0: i32, %arg1: i32) -> (i32, i32, i32) {
    %c0_i32 = arith.constant 0 : i32
    %c0_i32_0 = arith.constant 0 : i32
    return %arg0, %c0_i32, %arg1 : i32, i32, i32
  }
  func.func @transform_3(%arg0: i32, %arg1: i32) -> (i32, i32, i32) {
    %c0_i32 = arith.constant 0 : i32
    %c0_i32_0 = arith.constant 0 : i32
    %c0_i32_1 = arith.constant 0 : i32
    return %arg0, %c0_i32, %c0_i32_0 : i32, i32, i32
  }
}

</mosaic_0001>

<bundles_post_ra>
// kernel: tpu_custom_call.1
= control target key start
LH: loop header
LB: loop body
LE: loop exit
PB: predicated region body
PF: predicated region fallthrough
CT: control target
= control target key end

     0   :  { %s783_s0 = inlined_call_operand.<no memory space> [shape: f32[1], index: 0, kind: input, shape index: {}]   ;;  %s784_s1 = inlined_call_operand.hbm [shape: f32[2,8,32], index: 1, kind: input, shape index: {}]   ;;  %s785_s2 = inlined_call_operand.vmem [shape: f32[2,1,8], index: 2, kind: input, shape index: {}]   ;;  %s786_s3 = inlined_call_operand.hbm [shape: f32[2,1,32], index: 3, kind: output, shape index: {}]  }
   0x1   :  { %8 = sst [smem:[#allocation3]] %s783_s0 }
   0x2   :  { %9 = vsyncpa [#allocation5], 0 }
   0x3   :  { %11 = vsyncpa [#allocation5 + $0x1], 0 }
   0x4   :  { %12 = vsyncpa [#allocation6], 0 }
   0x5   :  { %14 = vsyncpa [#allocation6 + $0x1], 0  ;;  %s640_s14 = smov 0   ;;  %s642_s15 = smov 0  }
   0x6   :  { %s644_s16 = smov 0   ;;  %s646_s17 = smov 0  }
   0x7   :  { %s648_s18 = smov 0   ;;  %s650_s19 = smov 0  }
   0x8 LB: > { %s420_s0 = sadd.s32 4294967295, %s611_s19   ;;  %s421_s20 = sadd.s32 4294967294, %s611_s19   ;;  %s611_s19 = sphi %s650_s19, %s20_s19   ;;  %s607_s18 = sphi %s648_s18, %s798_s18   ;;  %s603_s17 = sphi %s646_s17, %s797_s17   ;;  %s599_s16 = sphi %s644_s16, %s796_s16   ;;  %s595_s15 = sphi %s642_s15, %s795_s15   ;;  %s591_s14 = sphi %s640_s14, %s794_s14  }
   0x9   : > { %s32_s21 = sadd.s32 1, %s607_s18  ;;  %s62_s22 = sadd.s32 1, %s599_s16 }
   0xa   : > { %p34_p0 = scmp.ge.s32.totalorder %s32_s21, 2  ;;  %p69_p1 = scmp.ne.s32.totalorder %s599_s16, %s595_s15 }
   0xb   : > { %p70_p2 = scmp.eq.s32.totalorder %s611_s19, 0  ;;  %p75_p3 = scmp.ne.s32.totalorder %s595_s15, %s591_s14 }
   0xc   : > { %s800_s21 = smov (%p34_p0, %s32_s21), 0  ;;  %p76_p5 = scmp.eq.s32.totalorder %s420_s0, 0 }
   0xd   : > { %p681_p4 = por %p70_p2, %p69_p1  ;;  %s57_s24 = ssub.s32 %s607_s18, %s800_s21 }
   0xe   : > { %p127_p6 = scmp.eq.s32.totalorder %s420_s0, 1  ;;  %p60_p7 = scmp.eq.s32.totalorder %s57_s24, 0 }
   0xf   : > { %p687_p8 = por %p76_p5, %p75_p3  ;;  %p133_p10 = scmp.eq.s32.totalorder %s421_s20, 1 }
  0x10   : > { %p691_p9 = por %p127_p6, %p69_p1  ;;  %p451_p13 = scmp.lt.s32.totalorder %s611_s19, 2 }
  0x11   : > { %s696_s27 = scalar_select %p60_p7, %s599_s16, %s62_s22  }
  0x12   : > { %p698_p11 = por %p133_p10, %p75_p3  ;;  %s156_s29 = sand.u32 1, %s599_s16  }
  0x13   : > { %s424_s30 = sshll.u32 %s156_s29, 3  ;;  %s425_s4 = sshll.u32 %s607_s18, 7 }
  0x14   : > { %s790_s28 = scalar_select %p698_p11, 1, 0 }
  0x15   : > { %s166_s7 = scalar_lea.hbm %s784_s1, %s425_s4  ;;  %s160_s8 = scalar_lea.vmem [#allocation4], %s424_s30 }
  0x16   : > { %s168_s9 = sshll.u32 %s160_s8, 4  ;;  %p711_p0 = pnand %p451_p13, %p681_p4  ;;  %s169_s9 = int_to_ptr.vmem [resolvable:$true] %s168_s9 }
  0x17   : > { %p426_p1 = scmp.ge.s32.totalorder %s611_s19, 1  ;;  %p182_p2 = scmp.lt.s32.totalorder %s611_s19, 3 }
  0x18   : > { %s157_s11 = scalar_lea.sflag [#allocation5], %s156_s29  ;;  %p505_p3 = pneg %p711_p0 }
  0x19   : > { %s516_s12 = scalar_lea.vmem %s169_s9, 128  ;;  %s613_s13 = smov [#allocation4]  }
  0x1a   : > { %p517_p5 = scmp.ne.s32.totalorder %s169_s9, %s516_s12  ;;  %s521_s0 = sshll.u32 %s613_s13, 4  ;;  %s522_s0 = int_to_ptr.vmem [resolvable:$false] %s521_s0 }
  0x1b   : > { %s523_s20 = scalar_lea.vmem %s522_s0, 256  ;;  %p524_p10 = scmp.lt.s32.totalorder %s169_s9, %s522_s0 }
  0x1c   : > { %p519_p6 = pnand %p517_p5, %p505_p3  ;;  %p525_p12 = scmp.lt.s32.totalorder %s523_s20, %s516_s12 }
  0x1e   : > { %p520_p7 = pneg %p519_p6  ;;  %p526_p4 = por %p525_p12, %p524_p10 }
  0x20   : > { %p527_p13 = pnand %p526_p4, %p520_p7 }
  0x22   : > { %530 = shalt.err (!%p527_p13)
}
  0x23   : > { %446 = dma.hbm_to_vmem [thread:$0]  (!%p711_p0), %s166_s7, 128, %s169_s9, %s157_s11  }
  0x24   : > { %p183_p11 = pnand %p426_p1, %p182_p2 }
  0x25   : > { %s726_s22 = sand.u32 (!%p183_p11), 1, %s595_s15  }
  0x26   : > { %186 = sbr.rel (%p183_p11) target bundleno = 268 (0x10c), region = 32  ;;  %s427_s23 = sshll.u32 (!%p183_p11), %s726_s22, 3 }
  0x27   : > { %s189_s24 = scalar_lea.sflag (!%p183_p11), [#allocation5], %s726_s22  ;;  %s192_s29 = scalar_lea.vmem (!%p183_p11), [#allocation4], %s427_s23 }
  0x2b   : > { %582 = dma.done.wait (%p687_p8), %s189_s24, 128  }
  0x2c   : > { %584 = vsyncadd (%p687_p8), %s189_s24, 4294967168  ;;  %vm230_vm0 = vcmask 253952   ;;  %p220_p12 = scmp.lt.s32.totalorder %s603_s17, 1  ;;  %v614_v0 = vmov 0.0   ;;  %vm615_vm1 = vmmov 0   ;;  %vm235_vm2 = vcmask 64512  }
  0x2d   : > { %231 = vst.msk [vmem:[#allocation2] sm:$0x1] %vm230_vm0, %v614_v0  ;;  %434 = vmatprep.subr.mxu0 %v614_v0  ;;  %436 = vmatprep.mubr.msk.f32.mxu0 %vm615_vm1, %v614_v0  ;;  %v232_v1 = vld [vmem:[%s192_s29] sm:$0xff]  ;;  %s316_s25 = sld [smem:[#allocation3]]  ;;  %s429_s7 = sshll.u32 %s603_s17, 4 }
  0x2e   : > { %s221_s30 = scalar_select %p220_p12, %s603_s17, 1  ;;  %435 = vmatpush3.msra.mxu0 %v232_v1 }
  0x2f   : > { %s219_s8 = scalar_lea.vmem [#allocation7], %s726_s22  ;;  %s331_s12 = scalar_lea.hbm %s786_s3, %s429_s7 }
  0x30   : > { %s225_s6 = scalar_lea.vmem %s785_s2, %s221_s30  ;;  %s333_s9 = sshll.u32 %s219_s8, 4  ;;  %s334_s9 = int_to_ptr.vmem [resolvable:$true] %s333_s9 }
  0x31   : > { %v233_v2 = vld [vmem:[%s225_s6] sm:$0x1]  ;;  %s321_s13 = scalar_lea.sflag [#allocation6], %s726_s22  ;;  %s531_s0 = scalar_lea.vmem %s334_s9, 16 }
  0x32   : > { %437 = vmatmul.mubr.msk.f32.vlgmr.msra.gmra.mxu0 %vm235_vm2, %v233_v2  ;;  %p532_p8 = scmp.ne.s32.totalorder %s334_s9, %s531_s0  ;;  %s616_s20 = smov [#allocation7]  }
  0x33   : > { %v317_v7 = vstv %s316_s25  ;;  %s535_s23 = sshll.u32 %s616_s20, 4  ;;  %s536_s23 = int_to_ptr.vmem [resolvable:$false] %s535_s23 }
  0x34   : > { %v234_v3 = vld [vmem:[#allocation2] sm:$0x1]  ;;  %p533_p11 = pnand %p532_p8, %p691_p9  ;;  %s537_s17 = scalar_lea.vmem %s536_s23, 32 }
  0x35   : > { %p538_p1 = scmp.lt.s32.totalorder %s334_s9, %s536_s23  ;;  %p539_p2 = scmp.lt.s32.totalorder %s537_s17, %s531_s0 }
  0x36   : > { %p534_p0 = pneg %p533_p11 }
  0x37   : > { %p540_p3 = por %p539_p2, %p538_p1 }
  0x39   : > { %p541_p5 = pnand %p540_p3, %p534_p0 }
  0xf2   : > { %v305_v4 = vpop.f32.mrf.mxu0 }
  0xf3   : > { %v309_v5 = vadd.f32 %v305_v4, %v234_v3 }
  0xf4   : > { %v438_v6 = vpop.f32.mrf.mxu0 }
  0xf5   : > { %311 = vst.msk [vmem:[#allocation2] sm:$0x1] %vm230_vm0, %v309_v5 }
  0xfc   : > { %v315_v8 = vld [vmem:[#allocation2] sm:$0x1] }
  0xfd   : > { %v318_v9 = vmul.f32 %v317_v7, %v315_v8 }
  0xff   : > { %319 = vst.msk [vmem:[%s219_s8] sm:$0x1] %vm230_vm0, %v318_v9 }
 0x100   : > { %544 = shalt.err (!%p541_p5)
}
 0x101   : > { %s545_s24 = scalar_lea.hbm %s331_s12, 16  ;;  %s549_s30 = scalar_lea.hbm %s786_s3, 32 }
 0x102   : > { %p546_p6 = scmp.ne.s32.totalorder %s331_s12, %s545_s24  ;;  %p550_p4 = scmp.lt.s32.totalorder %s331_s12, %s786_s3 }
 0x103   : > { %p551_p13 = scmp.lt.s32.totalorder %s549_s30, %s545_s24 }
 0x104   : > { %p547_p7 = pnand %p546_p6, %p691_p9 }
 0x105   : > { %p552_p12 = por %p551_p13, %p550_p4 }
 0x106   : > { %p548_p10 = pneg %p547_p7 }
 0x108   : > { %p553_p8 = pnand %p552_p12, %p548_p10 }
 0x10a   : > { %556 = shalt.err (!%p553_p8)
}
 0x10b   : > { %441 = dma.vmem_to_hbm [thread:$0]  (%p691_p9), %s334_s9, 16, %s331_s12, %s321_s13  }
 0x10c PF: > { %s345_s6 = sand.u32 1, %s591_s14   ;;  %p792_p11 = scmp.ne.s32.totalorder %s790_s28, 0 }
 0x10d   : > { %p793_p0 = scmp.ge.s32.totalorder %s611_s19, 2  ;;  %s346_s25 = scalar_lea.sflag [#allocation6], %s345_s6 }
 0x10f   : > { %p448_p1 = pnand %p793_p0, %p792_p11 }
 0x111   : > { %p449_p2 = pneg %p448_p1 }
 0x113   : > { %586 = dma.done.wait (%p449_p2), %s346_s25, 16  }
 0x114   : > { %588 = vsyncadd (%p449_p2), %s346_s25, 4294967280  ;;  %s20_s19 = sadd.s32 1, %s611_s19   ;;  %s794_s14 = smov %s595_s15 }
 0x115   : > { %p17_p3 = scmp.ge.s32.totalorder %s20_s19, 4   ;;  %s795_s15 = smov %s599_s16 }
 0x116   : > { %s796_s16 = smov %s696_s27  ;;  %s797_s17 = smov %s607_s18 }
 0x117   : > { %s798_s18 = smov %s800_s21  ;;  %19 = sbr.rel (!%p17_p3) target bundleno = 8 (0x8), region = 88 }
 0x11c   :  { %350 = vsyncpa [#allocation5], 1 }
 0x11d   :  { %352 = vsyncpa [#allocation5 + $0x1], 1 }
 0x11e   :  { %353 = vsyncpa [#allocation6], 1 }
 0x11f   :  { %355 = vsyncpa [#allocation6 + $0x1], 1 }

</bundles_post_ra>
